<compile_context>
chip_gen: v5e
topology: v5e:2x2
jax: 0.10.0
libtpu: 0.0.40
codegen_flags: <defaults>
</compile_context>

<pallas_src>
import functools
import math

import jax
import jax.numpy as jnp
from jax import lax
from jax.experimental import pallas as pl
from jax.experimental.pallas import tpu as pltpu

_MIB = 1024 * 1024
_EVAL_TILE_TARGET = 8 * _MIB     # x-tile target bytes (amortizes ~0.35us/step overhead)
_TRAIN_TILE_TARGET = 4 * _MIB    # dropout path keeps ~4 extra tile-sized temps
_VMEM_FLOOR = 32 * _MIB
_VMEM_CAP = 96 * _MIB


# ----------------------------- kernels ------------------------------------- #

def _pe_add_kernel(x_ref, pe_ref, o_ref):
    # x_ref: (tS, tB, D), pe_ref: (tS, 1, D) -> VPU broadcasts over the batch axis.
    o_ref[...] = x_ref[...] + pe_ref[...]


def _pe_add_dropout_kernel(seed_ref, x_ref, pe_ref, o_ref, *,
                           p, tile_s, tile_b, n_b, n_d):
    # Training path: inverted dropout with a stateless counter-based hash RNG.
    # Mask depends only on (seed, global element index) -> tiling invariant.
    y = x_ref[...] + pe_ref[...]
    shape = y.shape

    s_loc = lax.broadcasted_iota(jnp.int32, shape, 0)
    b_loc = lax.broadcasted_iota(jnp.int32, shape, 1)
    d_loc = lax.broadcasted_iota(jnp.int32, shape, 2)
    s_g = pl.program_id(0) * tile_s + s_loc
    b_g = pl.program_id(1) * tile_b + b_loc
    # Global flat index (int32 wraparound only matters for >2^31 elements; fine
    # for a hash input).
    flat = (s_g * n_b + b_g) * n_d + d_loc

    # lowbias32-style mixer, all uint32 ops (VPU integer path, hidden under HBM).
    h = flat.astype(jnp.uint32)
    h = h ^ (seed_ref[0].astype(jnp.uint32) * jnp.uint32(0x9E3779B9))
    h = (h ^ (h >> 16)) * jnp.uint32(0x7FEB352D)
    h = (h ^ (h >> 15)) * jnp.uint32(0x846CA68B)
    h = h ^ (h >> 16)

    # Compare the top 24 bits against p in fixed point (signed compare only).
    threshold = jnp.int32(min(max(int(round(p * (1 << 24))), 0), (1 << 24) - 1))
    keep = (h >> 8).astype(jnp.int32) >= threshold        # P(drop) ~= p

    scale = jnp.float32(1.0 / (1.0 - p))                  # f32 scale; cast on store
    y32 = y.astype(jnp.float32) * scale
    o_ref[...] = jnp.where(keep, y32, jnp.float32(0.0)).astype(o_ref.dtype)


# --------------------------- parameter setup -------------------------------- #

def make_pe_table(max_len: int, d_model: int, dtype=jnp.float32):
    """Sinusoidal table (max_len, 1, d_model) — same math/layout as PyTorch."""
    assert d_model % 2 == 0, "d_model must be even"
    position = jnp.arange(max_len, dtype=jnp.float32)[:, None]            # (L, 1)
    div_term = jnp.exp(jnp.arange(0, d_model, 2, dtype=jnp.float32)
                       * (-math.log(10000.0) / d_model))                   # (D/2,)
    angles = position * div_term                                           # (L, D/2)
    pe = jnp.zeros((max_len, d_model), dtype=jnp.float32)
    pe = pe.at[:, 0::2].set(jnp.sin(angles))
    pe = pe.at[:, 1::2].set(jnp.cos(angles))
    return pe.reshape(max_len, 1, d_model).astype(dtype)


# ------------------------------ tiling -------------------------------------- #

def _pick_tiles(S, B, D, itemsize, target_bytes, tile_s=None):
    sub = max(8, 32 // itemsize)                 # sublane multiple for this dtype
    row_bytes = max(1, B * D * itemsize)
    if row_bytes <= target_bytes:
        tB = B
        tS = max(1, target_bytes // row_bytes)
    else:
        # Huge B*D rows: also tile B (multiples of the sublane pack) so a block
        # stays a few MiB and double buffering fits v7x's 64 MiB VMEM.
        tS = 1
        tB = max(sub, (target_bytes // max(1, D * itemsize)) // sub * sub)
        tB = min(B, tB)
    if tile_s is not None:
        tS = tile_s
    tS = int(min(max(1, int(tS)), S))
    # Keep >= 2 grid cells along S so both v7x TensorCores get work.
    if tile_s is None and S >= 2 and pl.cdiv(S, tS) < 2:
        tS = -(-S // 2)
    return int(tS), int(tB)


def _vmem_limit(tS, tB, D, itemsize, training):
    tile_x = tS * tB * D * itemsize
    tile_pe = tS * D * itemsize
    need = 4 * tile_x + 2 * tile_pe              # 2 in-bufs + 2 out-bufs + 2 pe-bufs
    if training:
        need += 4 * tS * tB * D * 4              # f32/int32 temporaries (y, iota, hash)
    need += 4 * _MIB                             # internal scratch / padding slack
    return int(min(_VMEM_CAP, max(_VMEM_FLOOR, need)))


# ------------------------------ wrapper ------------------------------------- #

def positional_encoding(x, pe_table, *, p: float = 0.1,
                        training: bool = False, seed: int = 0,
                        tile_s: int | None = None):
    """x: (S, B, D). Returns x + pe[:S] (with inverted dropout if training)."""
    S, B, D = x.shape
    assert pe_table.ndim == 3 and pe_table.shape[1] == 1 and pe_table.shape[2] == D
    assert S <= pe_table.shape[0], "seq_len exceeds max_len of the pe table"
    pe = pe_table if pe_table.dtype == x.dtype else pe_table.astype(x.dtype)

    if training and p >= 1.0:
        return jnp.zeros_like(x)                 # everything dropped; avoid 1/(1-p)
    train = training and p > 0.0

    itemsize = jnp.dtype(x.dtype).itemsize
    target = _TRAIN_TILE_TARGET if train else _EVAL_TILE_TARGET
    tS, tB = _pick_tiles(S, B, D, itemsize, target, tile_s)
    grid = (pl.cdiv(S, tS), pl.cdiv(B, tB))

    cp = pltpu.CompilerParams(
        dimension_semantics=("parallel", "parallel"),
        vmem_limit_bytes=_vmem_limit(tS, tB, D, itemsize, train),
    )
    out_shape = jax.ShapeDtypeStruct((S, B, D), x.dtype)

    if not train:
        # Eval-mode dropout is the identity -> pure broadcasted add.
        return pl.pallas_call(
            _pe_add_kernel,
            out_shape=out_shape,
            grid_spec=pl.GridSpec(
                grid=grid,
                in_specs=[pl.BlockSpec((tS, tB, D), lambda i, j: (i, j, 0)),
                          pl.BlockSpec((tS, 1, D), lambda i, j: (i, 0, 0))],
                out_specs=pl.BlockSpec((tS, tB, D), lambda i, j: (i, j, 0)),
            ),
            compiler_params=cp,
            input_output_aliases={0: 0},         # alias x -> out
        )(x, pe)

    seed_arr = jnp.asarray([seed], dtype=jnp.int32)
    kernel = functools.partial(_pe_add_dropout_kernel, p=float(p),
                               tile_s=tS, tile_b=tB, n_b=B, n_d=D)
    return pl.pallas_call(
        kernel,
        out_shape=out_shape,
        grid_spec=pltpu.PrefetchScalarGridSpec(
            num_scalar_prefetch=1,
            grid=grid,
            in_specs=[pl.BlockSpec((tS, tB, D), lambda i, j, s: (i, j, 0)),
                      pl.BlockSpec((tS, 1, D), lambda i, j, s: (i, 0, 0))],
            out_specs=pl.BlockSpec((tS, tB, D), lambda i, j, s: (i, j, 0)),
        ),
        compiler_params=cp,
        input_output_aliases={1: 0},             # arg 0 is the seed; x is arg 1
    )(seed_arr, x, pe)


# -------------------------------- main -------------------------------------- #

if __name__ == "__main__":
    d_model = 32
    max_len = 64            # small stand-in for 5000; semantics identical
    seq_len = 8
    batch = 2
    p = 0.1

    key = jax.random.PRNGKey(0)
    x = jax.random.normal(key, (seq_len, batch, d_model), dtype=jnp.float32)

    pe_table = make_pe_table(max_len, d_model)               # (max_len, 1, D)
    y_ref = x + pe_table[:seq_len]                            # broadcast over batch

    # --- eval-mode path (dropout == identity), auto tiling ---
    y = positional_encoding(x, pe_table, p=p, training=False)
    y = jax.block_until_ready(y)
    assert y.shape == (seq_len, batch, d_model)
    assert bool(jnp.allclose(y, y_ref, atol=1e-6, rtol=1e-6))

    # --- eval-mode path with a forced multi-tile grid (exercises tiling) ---
    y_tiled = positional_encoding(x, pe_table, p=p, training=False, tile_s=4)
    y_tiled = jax.block_until_ready(y_tiled)
    assert bool(jnp.allclose(y_tiled, y_ref, atol=1e-6, rtol=1e-6))

    # --- training-mode path (inverted dropout), multi-tile grid ---
    y_drop = positional_encoding(x, pe_table, p=p, training=True, seed=123,
                                 tile_s=4)
    y_drop = jax.block_until_ready(y_drop)
    assert y_drop.shape == (seq_len, batch, d_model)
    # Every element is either 0 (dropped) or (x + pe) / (1 - p) (kept).
    kept_val = y_ref / (1.0 - p)
    ok = (jnp.abs(y_drop) < 1e-7) | (jnp.abs(y_drop - kept_val) < 1e-4)
    assert bool(jnp.all(ok))

    # --- tiling invariance of the dropout mask (counter-based RNG) ---
    y_drop2 = positional_encoding(x, pe_table, p=p, training=True, seed=123,
                                  tile_s=8)
    y_drop2 = jax.block_until_ready(y_drop2)
    assert bool(jnp.allclose(y_drop, y_drop2, atol=1e-6, rtol=1e-6))

    print("KERNEL_OK")
</pallas_src>

<mosaic_0001>
module attributes {stable_mosaic.version = 11 : i64} {
  func.func @_pe_add_kernel(%arg0: i32, %arg1: i32, %arg2: memref<4x2x32xf32, #tpu.memory_space<vmem>>, %arg3: memref<4x1x32xf32, #tpu.memory_space<vmem>>, %arg4: memref<4x2x32xf32, #tpu.memory_space<vmem>>) attributes {dimension_semantics = [#tpu.dimension_semantics<parallel>, #tpu.dimension_semantics<parallel>], iteration_bounds = array<i64: 2, 1>, scalar_prefetch = 0 : i64, scratch_operands = 0 : i64, tpu.core_type = #tpu.core_type<tc>, window_params = [{transform_indices = @transform_0, window_bounds = array<i64: 4, 2, 32>}, {transform_indices = @transform_1, window_bounds = array<i64: 4, 1, 32>}, {transform_indices = @transform_2, window_bounds = array<i64: 4, 2, 32>}]} {
    %c0 = arith.constant 0 : index
    %c0_0 = arith.constant 0 : index
    %c0_1 = arith.constant 0 : index
    %0 = vector.load %arg2[%c0, %c0_0, %c0_1] : memref<4x2x32xf32, #tpu.memory_space<vmem>>, vector<4x2x32xf32>
    %c0_2 = arith.constant 0 : index
    %c0_3 = arith.constant 0 : index
    %c0_4 = arith.constant 0 : index
    %1 = vector.load %arg3[%c0_2, %c0_3, %c0_4] : memref<4x1x32xf32, #tpu.memory_space<vmem>>, vector<4x1x32xf32>
    %2 = vector.broadcast %1 : vector<4x1x32xf32> to vector<4x2x32xf32>
    %3 = arith.addf %0, %2 : vector<4x2x32xf32>
    %c0_5 = arith.constant 0 : index
    %c0_6 = arith.constant 0 : index
    %c0_7 = arith.constant 0 : index
    %4 = vector.load %arg4[%c0_5, %c0_6, %c0_7] : memref<4x2x32xf32, #tpu.memory_space<vmem>>, vector<4x2x32xf32>
    tpu.vector_store %arg4[%c0_5, %c0_6, %c0_7], %3 {strides = array<i32>} : memref<4x2x32xf32, #tpu.memory_space<vmem>>, vector<4x2x32xf32>,
    return
  }
  func.func @transform_0(%arg0: i32, %arg1: i32) -> (i32, i32, i32) {
    %c0_i32 = arith.constant 0 : i32
    %c0_i32_0 = arith.constant 0 : i32
    return %arg0, %arg1, %c0_i32 : i32, i32, i32
  }
  func.func @transform_1(%arg0: i32, %arg1: i32) -> (i32, i32, i32) {
    %c0_i32 = arith.constant 0 : i32
    %c0_i32_0 = arith.constant 0 : i32
    %c0_i32_1 = arith.constant 0 : i32
    return %arg0, %c0_i32, %c0_i32_0 : i32, i32, i32
  }
  func.func @transform_2(%arg0: i32, %arg1: i32) -> (i32, i32, i32) {
    %c0_i32 = arith.constant 0 : i32
    %c0_i32_0 = arith.constant 0 : i32
    return %arg0, %arg1, %c0_i32 : i32, i32, i32
  }
}

</mosaic_0001>

<bundles_post_ra>
// kernel: tpu_custom_call.1
= control target key start
LH: loop header
LB: loop body
LE: loop exit
PB: predicated region body
PF: predicated region fallthrough
CT: control target
= control target key end

     0   :  { %7 = vsyncpa [#allocation3], 0  ;;  %s694_s0 = inlined_call_operand.hbm [shape: f32[8,2,32], index: 0, kind: input, shape index: {}, may-alias: {0,2}]   ;;  %s695_s1 = inlined_call_operand.vmem [shape: f32[64,1,32], index: 1, kind: input, shape index: {}]   ;;  %s696_s2 = inlined_call_operand.hbm [shape: f32[8,2,32], index: 2, kind: output, shape index: {}, may-alias: {0,2}]  }
   0x1   :  { %9 = vsyncpa [#allocation3 + $0x1], 0 }
   0x2   :  { %10 = vsyncpa [#allocation4], 0 }
   0x3   :  { %12 = vsyncpa [#allocation4 + $0x1], 0  ;;  %s563_s9 = smov 0   ;;  %s565_s10 = smov 0  }
   0x4   :  { %s567_s11 = smov 0   ;;  %s569_s12 = smov 0  }
   0x5   :  { %s571_s13 = smov 0   ;;  %s573_s14 = smov 0  }
   0x6 LB: > { %s342_s15 = sadd.s32 4294967295, %s542_s14   ;;  %s343_s16 = sadd.s32 4294967294, %s542_s14   ;;  %s542_s14 = sphi %s573_s14, %s18_s14   ;;  %s538_s13 = sphi %s571_s13, %s705_s13   ;;  %s534_s12 = sphi %s569_s12, %s704_s12   ;;  %s530_s11 = sphi %s567_s11, %s703_s11   ;;  %s526_s10 = sphi %s565_s10, %s702_s10   ;;  %s522_s9 = sphi %s563_s9, %s701_s9  }
   0x7   : > { %s30_s17 = sadd.s32 1, %s538_s13  ;;  %s39_s18 = sadd.s32 1, %s530_s11 }
   0x8   : > { %p32_p0 = scmp.ge.s32.totalorder %s30_s17, 2  ;;  %p46_p1 = scmp.ne.s32.totalorder %s530_s11, %s526_s10 }
   0x9   : > { %p47_p2 = scmp.eq.s32.totalorder %s542_s14, 0  ;;  %p52_p3 = scmp.ne.s32.totalorder %s526_s10, %s522_s9 }
   0xa   : > { %s707_s17 = smov (%p32_p0, %s30_s17), 0  ;;  %p53_p5 = scmp.eq.s32.totalorder %s342_s15, 0 }
   0xb   : > { %p604_p4 = por %p47_p2, %p46_p1  ;;  %s34_s20 = ssub.s32 %s538_s13, %s707_s17 }
   0xc   : > { %p104_p6 = scmp.eq.s32.totalorder %s342_s15, 1  ;;  %p37_p7 = scmp.eq.s32.totalorder %s34_s20, 0 }
   0xd   : > { %p610_p8 = por %p53_p5, %p52_p3  ;;  %p110_p10 = scmp.eq.s32.totalorder %s343_s16, 1 }
   0xe   : > { %p614_p9 = por %p104_p6, %p46_p1  ;;  %p345_p12 = scmp.ge.s32.totalorder %s542_s14, 2 }
   0xf   : > { %s619_s23 = scalar_select %p37_p7, %s530_s11, %s39_s18  }
  0x10   : > { %p621_p11 = por %p110_p10, %p52_p3  ;;  %p372_p13 = scmp.lt.s32.totalorder %s542_s14, 2 }
  0x11   : > { %s130_s25 = sand.u32 1, %s530_s11   ;;  %s358_s27 = sshll.u32 %s538_s13, 3 }
  0x12   : > { %s346_s26 = sshll.u32 %s130_s25, 3  ;;  %s140_s30 = scalar_lea.hbm %s694_s0, %s358_s27 }
  0x13   : > { %s134_s3 = scalar_lea.vmem [#allocation2], %s346_s26  ;;  %s141_s5 = sshll.u32 %s140_s30, 4  ;;  %s142_s5 = int_to_ptr.hbm [resolvable:$true] %s141_s5 }
  0x14   : > { %s143_s4 = sshll.u32 %s134_s3, 4  ;;  %p365_p0 = pnand %p372_p13, %p604_p4  ;;  %s144_s4 = int_to_ptr.vmem [resolvable:$true] %s143_s4 }
  0x15   : > { %p349_p1 = scmp.ge.s32.totalorder %s542_s14, 1  ;;  %s131_s6 = scalar_lea.sflag [#allocation3], %s130_s25 }
  0x16   : > { %s544_s7 = smov 32   ;;  %s545_s8 = smov 2  }
  0x17   : > { %367 = dma.hbm_to_vmem [thread:$0]  (!%p365_p0), %s142_s5, 128, %s144_s4, %s131_s6, %s544_s7, %s544_s7, %s545_s8  }
  0x18   : > { %p159_p2 = scmp.lt.s32.totalorder %s542_s14, 3 }
  0x1a   : > { %p160_p3 = pnand %p349_p1, %p159_p2 }
  0x1b   : > { %s637_s15 = sand.u32 (!%p160_p3), 1, %s526_s10  }
  0x1c   : > { %163 = sbr.rel (%p160_p3) target bundleno = 53 (0x35), region = 28  ;;  %s350_s16 = sshll.u32 (!%p160_p3), %s637_s15, 3 }
  0x1d   : > { %s166_s18 = scalar_lea.sflag (!%p160_p3), [#allocation3], %s637_s15  ;;  %s169_s20 = scalar_lea.vmem (!%p160_p3), [#allocation2], %s350_s16 }
  0x21   : > { %513 = dma.done.wait (%p610_p8), %s166_s18, 128  }
  0x22   : > { %515 = vsyncadd (%p610_p8), %s166_s18, 4294967168  ;;  %s352_s19 = sshll.u32 %s534_s12, 2  ;;  %s359_s25 = sshll.u32 %s534_s12, 3  ;;  %vm226_vm0 = vcmask 254976   ;;  %v202_v0 = vld [vmem:[%s169_s20] sm:$0x3] }
  0x23   : > { %p197_p4 = scmp.lt.s32.totalorder %s352_s19, 63  ;;  %s244_s3 = scalar_lea.hbm %s696_s2, %s359_s25  ;;  %v203_v2 = vld [vmem:[%s169_s20 + $0x2] sm:$0x3]  ;;  %v204_v5 = vld [vmem:[%s169_s20 + $0x4] sm:$0x3] }
  0x24   : > { %s194_s4 = scalar_lea.vmem [#allocation5], %s350_s16  ;;  %s247_s6 = sshll.u32 %s244_s3, 4  ;;  %v205_v8 = vld [vmem:[%s169_s20 + $0x6] sm:$0x3]  ;;  %s248_s6 = int_to_ptr.hbm [resolvable:$true] %s247_s6 }
  0x25   : > { %s709_s19 = smov (!%p197_p4, %s352_s19), 63  ;;  %s245_s5 = sshll.u32 %s194_s4, 4  ;;  %s653_s5 = int_to_ptr.vmem [resolvable:$true] %s245_s5 }
  0x26   : > { %s199_s28 = scalar_lea.vmem %s695_s1, %s709_s19  ;;  %s232_s12 = scalar_lea.sflag [#allocation4], %s637_s15 }
  0x27   : > { %v426_v1 = vld [vmem:[%s199_s28] ss:$0 sm:$0xff]  ;;  %v427_v3 = vld [vmem:[%s199_s28 + $0x1] ss:$0 sm:$0xff]  ;;  %v428_v6 = vld [vmem:[%s199_s28 + $0x2] ss:$0 sm:$0xff] }
  0x28   : > { %v222_v4 = vadd.f32 %v426_v1, %v202_v0  ;;  %v223_v7 = vadd.f32 %v427_v3, %v203_v2  ;;  %v429_v9 = vld [vmem:[%s199_s28 + $0x3] ss:$0 sm:$0xff]  ;;  %v224_v10 = vadd.f32 %v428_v6, %v204_v5  ;;  %s474_s21 = sshra.s32 %s248_s6, 4  ;;  %s480_s18 = scalar_lea.hbm %s696_s2, 16  ;;  %s475_s21 = int_to_ptr.hbm [resolvable:$true] %s474_s21 }
  0x29   : > { %v225_v11 = vadd.f32 %v429_v9, %v205_v8  ;;  %s476_s7 = scalar_lea.hbm %s475_s21, 8  ;;  %p481_p8 = scmp.lt.s32.totalorder %s475_s21, %s696_s2 }
  0x2a   : > { %227 = vst.msk [vmem:[%s194_s4] sm:$0x3] %vm226_vm0, %v222_v4  ;;  %p477_p5 = scmp.ne.s32.totalorder %s475_s21, %s476_s7  ;;  %p482_p10 = scmp.lt.s32.totalorder %s480_s18, %s476_s7 }
  0x2b   : > { %228 = vst.msk [vmem:[%s194_s4 + $0x2] sm:$0x3] %vm226_vm0, %v223_v7 }
  0x2c   : > { %229 = vst.msk [vmem:[%s194_s4 + $0x4] sm:$0x3] %vm226_vm0, %v224_v10  ;;  %p478_p6 = pnand %p477_p5, %p614_p9  ;;  %p483_p13 = por %p482_p10, %p481_p8 }
  0x2d   : > { %230 = vst.msk [vmem:[%s194_s4 + $0x6] sm:$0x3] %vm226_vm0, %v225_v11 }
  0x2e   : > { %p479_p7 = pneg %p478_p6 }
  0x30   : > { %p484_p0 = pnand %p483_p13, %p479_p7 }
  0x32   : > { %487 = shalt.err (!%p484_p0)
}
  0x33   : > { %s546_s15 = smov 32   ;;  %s547_s25 = smov 2  }
  0x34   : > { %362 = dma.vmem_to_hbm [thread:$0]  (%p614_p9), %s653_s5, 128, %s248_s6, %s232_s12, %s546_s15, %s546_s15, %s547_s25  }
  0x35 PF: > { %s262_s26 = sand.u32 1, %s522_s9   ;;  %p369_p1 = pnand %p345_p12, %p621_p11 }
  0x36   : > { %s263_s27 = scalar_lea.sflag [#allocation4], %s262_s26 }
  0x37   : > { %p370_p2 = pneg %p369_p1 }
  0x39   : > { %517 = dma.done.wait (%p370_p2), %s263_s27, 128  }
  0x3a   : > { %519 = vsyncadd (%p370_p2), %s263_s27, 4294967168  ;;  %s18_s14 = sadd.s32 1, %s542_s14   ;;  %s701_s9 = smov %s526_s10 }
  0x3b   : > { %p15_p3 = scmp.ge.s32.totalorder %s18_s14, 4   ;;  %s702_s10 = smov %s530_s11 }
  0x3c   : > { %s703_s11 = smov %s619_s23  ;;  %s704_s12 = smov %s538_s13 }
  0x3d   : > { %s705_s13 = smov %s707_s17  ;;  %17 = sbr.rel (!%p15_p3) target bundleno = 6 (0x6), region = 76 }
  0x42   :  { %269 = vsyncpa [#allocation3], 1 }
  0x43   :  { %271 = vsyncpa [#allocation3 + $0x1], 1 }
  0x44   :  { %272 = vsyncpa [#allocation4], 1 }
  0x45   :  { %274 = vsyncpa [#allocation4 + $0x1], 1 }

</bundles_post_ra>
